<compile_context>
chip_gen: v7x
topology: tpu7x:2x2x1
jax: 0.10.0
libtpu: 0.0.40
codegen_flags: <defaults>
</compile_context>

<pallas_src>
import functools

import jax
import jax.numpy as jnp
from jax import lax
from jax.experimental import pallas as pl
from jax.experimental.pallas import tpu as pltpu

_MIB = 1024 * 1024
_MIN_BATCH_TILE_ROWS = 512  # below this, per-grid-step overhead dominates -> split F instead


def _round_up(x: int, m: int) -> int:
    return ((x + m - 1) // m) * m


def _vmem_capacity_bytes() -> int:
    """Per-TensorCore VMEM capacity; falls back to the smallest listed gen (v7x, 64 MiB)."""
    try:
        return int(pltpu.get_tpu_info().vmem_capacity_bytes)
    except Exception:
        return 64 * _MIB


def _choose_tiles(batch, num_features, x_budget_bytes, batch_tile=None, feature_tile=None):
    """Byte-based tile selection.

    Returns (tb, tf): batch tile (multiple of 8) and feature tile (== F, or a
    multiple of 128 when the feature axis must be split to fit VMEM).
    """
    itemsize = 4  # stream / accumulate in f32
    padded_f = _round_up(num_features, 128)  # lane padding of the x block in VMEM

    if feature_tile is not None:
        tf = _round_up(min(int(feature_tile), num_features), 128)
        if tf >= num_features:
            tf = num_features
    else:
        tf = num_features

    row_bytes = 2 * _round_up(tf, 128) * itemsize  # double-buffered x bytes per row
    tb = max(1, x_budget_bytes // row_bytes)

    if feature_tile is None and tb < _MIN_BATCH_TILE_ROWS and num_features > 128:
        # Large-F path: keep the batch tile above the step-overhead floor and split
        # the feature (reduction) axis instead.
        tb = _MIN_BATCH_TILE_ROWS
        tf = max(128, (x_budget_bytes // (2 * tb * itemsize)) // 128 * 128)
        if tf >= num_features:
            tf = num_features

    if batch_tile is not None:
        tb = int(batch_tile)

    b8 = _round_up(batch, 8)
    tb = min(tb, b8)
    if b8 >= 16:
        # Keep at least two batch tiles so both v7x TensorCores get work.
        tb = min(tb, _round_up(pl.cdiv(batch, 2), 8))
    tb = max(8, (tb // 8) * 8)
    return tb, tf


def _feature_weight_kernel(x_ref, w_ref, o_ref, *, num_features, feature_tile):
    j = pl.program_id(1)  # feature (reduction) axis -- last, "arbitrary"

    @pl.when(j == 0)
    def _init():
        o_ref[...] = jnp.zeros_like(o_ref)

    x = x_ref[...].astype(jnp.float32)   # (tb, tf)
    w = w_ref[...].astype(jnp.float32)   # (1, tf) -> broadcasts over rows
    prod = x * w
    if num_features % feature_tile != 0:
        # Ragged last feature block: mask out-of-range columns so garbage reads
        # never reach the accumulator. (Static condition: no code when F % tf == 0.)
        valid = jnp.minimum(num_features - j * feature_tile, feature_tile)
        col = lax.broadcasted_iota(jnp.int32, prod.shape, 1)
        prod = jnp.where(col < valid, prod, 0.0)
    part = jnp.sum(prod, axis=-1)        # (tb,)  -- lane (XLU) reduction
    # Lane-dense accumulation into the resident (1, 1, tb) output block.
    o_ref[...] += part.reshape(o_ref.shape)


@functools.partial(jax.jit, static_argnames=("batch_tile", "feature_tile"))
def feature_model_forward(x, w, *, batch_tile=None, feature_tile=None):
    """Equivalent of FeatureModel.forward.

    x: (B, F); w: (1, F) (PyTorch nn.Linear weight layout). Returns (B, 1).
    """
    orig_b, num_features = x.shape
    assert w.shape == (1, num_features), w.shape

    batch = orig_b
    if batch < 8:
        # Tiny-batch corner only (copies < 8 rows, negligible); large ragged B is
        # handled by the ragged last grid block, never by padding x.
        x = jnp.pad(x, ((0, 8 - batch), (0, 0)))
        batch = 8

    cap = _vmem_capacity_bytes()                        # 128 MiB (v5e/v6e) / 64 MiB (v7x)
    x_budget = max(4 * _MIB, min(cap // 2, 48 * _MIB))  # bytes for the 2 double-buffered x tiles
    vmem_limit = int(min(cap - 8 * _MIB, x_budget + 8 * _MIB))

    tb, tf = _choose_tiles(batch, num_features, x_budget, batch_tile, feature_tile)
    nb = pl.cdiv(batch, tb)
    nf = pl.cdiv(num_features, tf)

    kernel = functools.partial(
        _feature_weight_kernel, num_features=num_features, feature_tile=tf
    )

    out = pl.pallas_call(
        kernel,
        out_shape=jax.ShapeDtypeStruct((nb, 1, tb), jnp.float32),
        grid_spec=pl.GridSpec(
            grid=(nb, nf),
            in_specs=[
                pl.BlockSpec((tb, tf), lambda i, j: (i, j)),   # x streams per tile
                pl.BlockSpec((1, tf), lambda i, j: (0, j)),    # w resident across batch tiles
            ],
            # Lane-dense row of per-sample sums; constant across j -> resident accumulator.
            out_specs=pl.BlockSpec((1, 1, tb), lambda i, j: (i, 0, 0)),
        ),
        compiler_params=pltpu.CompilerParams(
            dimension_semantics=("parallel", "arbitrary"),
            vmem_limit_bytes=vmem_limit,
        ),
        cost_estimate=pl.CostEstimate(
            flops=2 * orig_b * num_features,
            transcendentals=0,
            bytes_accessed=4 * (orig_b * num_features + num_features + orig_b),
        ),
    )(x, w)

    # (nb, 1, tb) -> (nb*tb,) is a free contiguous reshape; garbage from ragged
    # tail rows (indices >= B) is sliced off here.
    return out.reshape(nb * tb)[:orig_b].reshape(orig_b, 1).astype(x.dtype)


def init_feature_model_weights(key: jax.Array, num_features: int) -> jax.Array:
    """Deterministic init matching torch.nn.Linear default: U(-1/sqrt(in), 1/sqrt(in))."""
    bound = 1.0 / jnp.sqrt(jnp.float32(num_features))
    return jax.random.uniform(
        key, (1, num_features), dtype=jnp.float32, minval=-bound, maxval=bound
    )


if __name__ == "__main__":
    key = jax.random.PRNGKey(0)
    k_x1, k_x2, k_x3, k_w1, k_w3 = jax.random.split(key, 5)

    def ref_forward(x, w):  # pure-f32 reference (same math as nn.Linear, no MXU rounding)
        return jnp.sum(x * w, axis=-1, keepdims=True)

    num_features = 32
    w = init_feature_model_weights(k_w1, num_features)

    # Case 1: sublane-aligned batch.
    x1 = jax.random.normal(k_x1, (8, num_features), dtype=jnp.float32)
    out1 = jax.block_until_ready(feature_model_forward(x1, w))
    assert out1.shape == (8, 1), out1.shape
    assert jnp.allclose(out1, ref_forward(x1, w), atol=1e-5, rtol=1e-5), "mismatch (case 1)"

    # Case 2: ragged batch -- exercises the ragged last grid block (no x pad copy).
    x2 = jax.random.normal(k_x2, (13, num_features), dtype=jnp.float32)
    out2 = jax.block_until_ready(feature_model_forward(x2, w))
    assert out2.shape == (13, 1), out2.shape
    assert jnp.allclose(out2, ref_forward(x2, w), atol=1e-5, rtol=1e-5), "mismatch (case 2)"

    # Case 3: forced feature split -- exercises the large-F accumulation + ragged-F masking path.
    num_features3 = 160
    w3 = init_feature_model_weights(k_w3, num_features3)
    x3 = jax.random.normal(k_x3, (13, num_features3), dtype=jnp.float32)
    out3 = jax.block_until_ready(
        feature_model_forward(x3, w3, batch_tile=8, feature_tile=128)
    )
    assert out3.shape == (13, 1), out3.shape
    assert jnp.allclose(out3, ref_forward(x3, w3), atol=1e-4, rtol=1e-4), "mismatch (case 3)"

    print("KERNEL_OK")
</pallas_src>

<mosaic_0001>
module attributes {stable_mosaic.version = 11 : i64} {
  func.func @_feature_weight_kernel(%arg0: i32, %arg1: i32, %arg2: memref<8x32xf32, #tpu.memory_space<vmem>>, %arg3: memref<1x32xf32, #tpu.memory_space<vmem>>, %arg4: memref<1x1x8xf32, #tpu.memory_space<vmem>>) attributes {dimension_semantics = [#tpu.dimension_semantics<parallel>, #tpu.dimension_semantics<arbitrary>], iteration_bounds = array<i64: 1, 1>, scalar_prefetch = 0 : i64, scratch_operands = 0 : i64, tpu.core_type = #tpu.core_type<tc>, window_params = [{transform_indices = @transform_0, window_bounds = array<i64: 8, 32>}, {transform_indices = @transform_1, window_bounds = array<i64: 1, 32>}, {transform_indices = @transform_2, window_bounds = array<i64: 1, 1, 8>}]} {
    %c0_i32 = arith.constant 0 : i32
    %0 = arith.cmpi eq, %arg1, %c0_i32 : i32
    %1 = arith.extui %0 : i1 to i32
    %c0_i32_0 = arith.constant 0 : i32
    %2 = arith.cmpi ne, %1, %c0_i32_0 : i32
    scf.if %2 {
      %cst_10 = arith.constant 0.000000e+00 : f32
      %12 = vector.broadcast %cst_10 : f32 to vector<1x1x8xf32>
      %c0_11 = arith.constant 0 : index
      %c0_12 = arith.constant 0 : index
      %c0_13 = arith.constant 0 : index
      %13 = vector.load %arg4[%c0_11, %c0_12, %c0_13] : memref<1x1x8xf32, #tpu.memory_space<vmem>>, vector<1x1x8xf32>
      tpu.vector_store %arg4[%c0_11, %c0_12, %c0_13], %12 {strides = array<i32>} : memref<1x1x8xf32, #tpu.memory_space<vmem>>, vector<1x1x8xf32>,
    } else {
    }
    %c0 = arith.constant 0 : index
    %c0_1 = arith.constant 0 : index
    %3 = vector.load %arg2[%c0, %c0_1] : memref<8x32xf32, #tpu.memory_space<vmem>>, vector<8x32xf32>
    %c0_2 = arith.constant 0 : index
    %c0_3 = arith.constant 0 : index
    %4 = vector.load %arg3[%c0_2, %c0_3] : memref<1x32xf32, #tpu.memory_space<vmem>>, vector<1x32xf32>
    %5 = vector.broadcast %4 : vector<1x32xf32> to vector<8x32xf32>
    %6 = arith.mulf %3, %5 : vector<8x32xf32>
    %cst = arith.constant dense<0.000000e+00> : vector<8xf32>
    %7 = vector.multi_reduction <add>, %6, %cst [1] : vector<8x32xf32> to vector<8xf32>
    %c0_4 = arith.constant 0 : index
    %c0_5 = arith.constant 0 : index
    %c0_6 = arith.constant 0 : index
    %8 = vector.load %arg4[%c0_4, %c0_5, %c0_6] : memref<1x1x8xf32, #tpu.memory_space<vmem>>, vector<1x1x8xf32>
    %9 = vector.shape_cast %7 : vector<8xf32> to vector<1x1x8xf32>
    %10 = arith.addf %8, %9 : vector<1x1x8xf32>
    %c0_7 = arith.constant 0 : index
    %c0_8 = arith.constant 0 : index
    %c0_9 = arith.constant 0 : index
    %11 = vector.load %arg4[%c0_7, %c0_8, %c0_9] : memref<1x1x8xf32, #tpu.memory_space<vmem>>, vector<1x1x8xf32>
    tpu.vector_store %arg4[%c0_7, %c0_8, %c0_9], %10 {strides = array<i32>} : memref<1x1x8xf32, #tpu.memory_space<vmem>>, vector<1x1x8xf32>,
    return
  }
  func.func @transform_0(%arg0: i32, %arg1: i32) -> (i32, i32) {
    %c0_i32 = arith.constant 0 : i32
    return %arg0, %arg1 : i32, i32
  }
  func.func @transform_1(%arg0: i32, %arg1: i32) -> (i32, i32) {
    %c0_i32 = arith.constant 0 : i32
    %c0_i32_0 = arith.constant 0 : i32
    return %c0_i32, %arg1 : i32, i32
  }
  func.func @transform_2(%arg0: i32, %arg1: i32) -> (i32, i32, i32) {
    %c0_i32 = arith.constant 0 : i32
    %c0_i32_0 = arith.constant 0 : i32
    %c0_i32_1 = arith.constant 0 : i32
    return %arg0, %c0_i32, %c0_i32_0 : i32, i32, i32
  }
}

</mosaic_0001>

<bundles_post_ra>
// kernel: feature_model_forward.1
= control target key start
LH: loop header
LB: loop body
LE: loop exit
PB: predicated region body
PF: predicated region fallthrough
CT: control target
= control target key end

     0   :  { %7 = vsyncpa [#allocation3], 0  ;;  %s272_s0 = inlined_call_operand.hbm [shape: f32[8,32], index: 0, kind: input, shape index: {}]   ;;  %s273_s1 = inlined_call_operand.vmem [shape: f32[1,32], index: 1, kind: input, shape index: {}]   ;;  %s274_s2 = inlined_call_operand.hbm [shape: f32[1,1,8], index: 2, kind: output, shape index: {}]  }
   0x1   :  { %8 = vsyncpa [#allocation4], 0  ;;  %s223_s9 = smov [#allocation2]   ;;  %s175_s13 = scalar_lea.hbm %s272_s0, 128 }
   0x2   :  { %s15_s10 = sshll.u32 %s223_s9, 4  ;;  %p176_p0 = scmp.ne.s32.totalorder %s272_s0, %s175_s13  ;;  %s16_s10 = int_to_ptr.vmem [resolvable:$true] %s15_s10 }
   0x3   :  { %p179_p1 = scmp.lt.u32.totalorder %s175_s13, %s272_s0 }
   0x5   :  { %p181_p2 = pnand %p179_p1, %p176_p0 }
   0x7   :  { %184 = shalt.err (!%p181_p2)
}
   0x8   :  { %s185_s18 = scalar_lea.vmem %s16_s10, 128  ;;  %p190_p4 = scmp.lt.s32.totalorder %s16_s10, %s16_s10 }
   0x9   :  { %p186_p3 = scmp.ne.s32.totalorder %s16_s10, %s185_s18  ;;  %p191_p5 = scmp.lt.s32.totalorder %s185_s18, %s185_s18 }
   0xb   :  { %p192_p6 = por %p191_p5, %p190_p4 }
   0xd   :  { %p193_p7 = pnand %p192_p6, %p186_p3 }
   0xf   :  { %196 = shalt.err (!%p193_p7)
}
  0x10   :  { %18 = dma.hbm_to_vmem [thread:$0]  %s272_s0, 128, %s16_s10, [#allocation3]  }
  0x11   :  { %219 = dma.done.wait [#allocation3], 128  }
  0x12   :  { %220 = vsyncadd [#allocation3], 4294967168  ;;  %vm28_vm0 = vcmask 57344   ;;  %v224_v0 = vmov 0.0   ;;  %v30_v1 = vld [vmem:[#allocation2] sm:$0xff]  ;;  %vm39_vm1 = vcmask 261120   ;;  %v45_v6 = vlaneseq }
  0x13   :  { %29 = vst.msk [vmem:[#allocation5] sm:$0x1] %vm28_vm0, %v224_v0  ;;  %v168_v2 = vld [vmem:[%s273_s1] ss:$0 sm:$0xff]  ;;  %v225_v5 = vmov 0   ;;  %s227_s0 = smov [#allocation5]  }
  0x14   :  { %v38_v3 = vmul.f32 %v168_v2, %v30_v1  ;;  %174 = vset.pattern.permute.xlu0 %v225_v5  ;;  %v46_v7 = vshrl.u32 %v45_v6, 7  ;;  %v130_v8 = vand.u32 127, %v45_v6  ;;  %v226_v10 = vmov 1966171168   ;;  %s159_s1 = sshll.u32 %s227_s0, 4  ;;  %s160_s1 = int_to_ptr.vmem [resolvable:$true] %s159_s1 }
  0x15   :  { %v82_v11 = vunpack.c.l.s4 %v226_v10  ;;  %s197_s23 = scalar_lea.vmem %s160_s1, 16  ;;  %s201_s24 = scalar_lea.vmem %s160_s1, 32 }
  0x16   :  { %v40_v4 = vsel %vm39_vm1, %v38_v3, 0.0  ;;  %v133_v9 = vsub.s32 %v130_v8, %v46_v7  ;;  %v47_v13 = vsub.s32 0, %v46_v7  ;;  %v51_v14 = vsub.s32 1, %v46_v7  ;;  %p198_p8 = scmp.ne.s32.totalorder %s160_s1, %s197_s23  ;;  %p202_p9 = scmp.lt.s32.totalorder %s160_s1, %s160_s1 }
  0x17   :  { %41 = vadd.xlane.f32.xlu0 %v40_v4  ;;  %v83_v12 = vunpack.c.0.s8 %v82_v11  ;;  %v55_v15 = vsub.s32 2, %v46_v7  ;;  %v59_v16 = vsub.s32 3, %v46_v7  ;;  %v63_v17 = vsub.s32 4, %v46_v7  ;;  %p203_p10 = scmp.lt.s32.totalorder %s201_s24, %s197_s23 }
  0x18   :  { %v67_v18 = vsub.s32 5, %v46_v7  ;;  %v71_v19 = vsub.s32 6, %v46_v7  ;;  %v75_v20 = vsub.s32 7, %v46_v7 }
  0x19   :  { %v86_v22 = vsub.s32 %v83_v12, %v46_v7  ;;  %p204_p11 = por %p203_p10, %p202_p9 }
  0x1a   :  { %v43_v47 = vld [vmem:[#allocation5] sm:$0x1] }
  0x1b   :  { %p205_p12 = pnand %p204_p11, %p198_p8 }
  0xa4   :  { %v42_v21 = vpop.xlane.xlu0 %41 }
  0xa5   :  { %v48_v23 = vrot.slane %v42_v21, %v47_v13  ;;  %v52_v24 = vrot.slane %v42_v21, %v51_v14  ;;  %v56_v25 = vrot.slane %v42_v21, %v55_v15  ;;  %v60_v26 = vrot.slane %v42_v21, %v59_v16 }
  0xa6   :  { %v64_v27 = vrot.slane %v42_v21, %v63_v17  ;;  %v68_v28 = vrot.slane %v42_v21, %v67_v18  ;;  %v72_v29 = vrot.slane %v42_v21, %v71_v19  ;;  %v76_v30 = vrot.slane %v42_v21, %v75_v20 }
  0xa7   :  { %v77_v31 = vcombine.low %v48_v23, %v52_v24  ;;  %v78_v32 = vcombine.low %v56_v25, %v60_v26 }
  0xa8   :  { %v79_v33 = vcombine.low %v64_v27, %v68_v28  ;;  %v80_v34 = vcombine.low %v72_v29, %v76_v30 }
  0xa9   :  { %v87_v35 = vrot.slane %v77_v31, %v86_v22  ;;  %v94_v36 = vrot.slane %v78_v32, %v86_v22 }
  0xaa   :  { %v101_v37 = vrot.slane %v79_v33, %v86_v22  ;;  %v108_v38 = vrot.slane %v80_v34, %v86_v22 }
  0xab   :  { %v109_v39 = vcombine.low %v87_v35, %v94_v36 }
  0xac   :  { %v110_v40 = vcombine.low %v101_v37, %v108_v38 }
  0xad   :  { %v117_v41 = vrot.slane %v109_v39, %v86_v22 }
  0xae   :  { %v124_v42 = vrot.slane %v110_v40, %v86_v22 }
  0xb0   :  { %v125_v43 = vcombine.low %v117_v41, %v124_v42 }
  0xb2   :  { %127 = vperm.xlu0 %174, %v125_v43  }
 0x131   :  { %v128_v44 = vpop.permute.xlu0 %127 }
 0x132   :  { %v134_v45 = vrot.slane %v128_v44, %v133_v9 }
 0x134   :  { %v141_v46 = vrot.slane %v134_v45, %v86_v22 }
 0x136   :  { %v148_v48 = vrot.slane %v141_v46, %v86_v22 }
 0x138   :  { %v150_v49 = vadd.f32 %v148_v48, %v43_v47 }
 0x13a   :  { %152 = vst.msk [vmem:[#allocation5] sm:$0x1] %vm28_vm0, %v150_v49 }
 0x13b   :  { %208 = shalt.err (!%p205_p12)
}
 0x13c   :  { %s209_s27 = scalar_lea.hbm %s274_s2, 16 }
 0x13d   :  { %p210_p13 = scmp.ne.s32.totalorder %s274_s2, %s209_s27  ;;  %p213_p0 = scmp.lt.u32.totalorder %s209_s27, %s274_s2 }
 0x13f   :  { %p215_p1 = pnand %p213_p0, %p210_p13 }
 0x141   :  { %218 = shalt.err (!%p215_p1)
}
 0x142   :  { %162 = dma.vmem_to_hbm [thread:$0]  %s160_s1, 16, %s274_s2, [#allocation4]  }
 0x143   :  { %221 = dma.done.wait [#allocation4], 16  }
 0x144   :  { %222 = vsyncadd [#allocation4], 4294967280 }
 0x145   :  { %166 = vsyncpa [#allocation3], 1 }
 0x146   :  { %167 = vsyncpa [#allocation4], 1 }

</bundles_post_ra>
